<compile_context>
chip_gen: v7x
topology: tpu7x:2x2x1
jax: 0.10.0
libtpu: 0.0.40
codegen_flags: <defaults>
</compile_context>

<pallas_src>
import functools

import jax
import jax.numpy as jnp
from jax.experimental import pallas as pl
from jax.experimental.pallas import tpu as pltpu

NEG_SLOPE = 0.2
BN_EPS = 1e-5
LANE = 128
SUBLANE = 8


def _round_up(n, m):
    return (n + m - 1) // m * m


# ----------------------------- fused Pallas kernel -------------------------- #
def _make_fcblock_kernel(block_num):
    """Build the fused kernel for a given (static) block_num.

    Ref order: x, fc1_w, fc1_sh, (w1, sh1, w2, sh2) * block_num, fc2_w, fc2_sh, out.
    BN scales are pre-folded into the weights; epilogue = +shift, LeakyReLU.
    The activation chain lives entirely in vregs/VMEM (no HBM traffic between
    layers); the Python loop below unrolls at trace time.
    """

    def kernel(*refs):
        x_ref = refs[0]
        o_ref = refs[-1]
        p = refs[1:-1]

        def layer(h, w_ref, sh_ref, act):
            y = jnp.dot(h, w_ref[...], preferred_element_type=jnp.float32)
            y = y + sh_ref[...]
            if act:
                y = jnp.where(y >= 0.0, y, NEG_SLOPE * y)
            return y

        h = layer(x_ref[...], p[0], p[1], act=True)            # fc_1 + bn_1 + lrelu
        i = 2
        for _ in range(block_num):                             # residual blocks
            y = layer(h, p[i], p[i + 1], act=True)             # w1 + bn1 + lrelu
            y = layer(y, p[i + 2], p[i + 3], act=True)         # w2 + bn2 + lrelu
            h = h + y                                          # residual add
            i += 4
        o_ref[...] = layer(h, p[i], p[i + 1], act=False).astype(o_ref.dtype)  # fc_2

    return kernel


@functools.partial(jax.jit, static_argnames=("block_num", "channel_out"))
def fcblock_forward_pallas(x, padded_params, *, block_num, channel_out):
    fc1_w, fc1_sh = padded_params["fc1"]
    flat = [fc1_w, fc1_sh]
    for (w1, sh1), (w2, sh2) in padded_params["blocks"]:
        flat += [w1, sh1, w2, sh2]
    fc2_w, fc2_sh = padded_params["fc2"]
    flat += [fc2_w, fc2_sh]

    n, cin = x.shape
    n_pad = _round_up(n, SUBLANE)
    cin_pad = fc1_w.shape[0]
    x_pad = jnp.zeros((n_pad, cin_pad), jnp.float32).at[:n, :cin].set(x)

    out_pad = fc2_w.shape[1]
    vmem = pl.BlockSpec(memory_space=pltpu.MemorySpace.VMEM)

    out = pl.pallas_call(
        _make_fcblock_kernel(block_num),
        out_shape=jax.ShapeDtypeStruct((n_pad, out_pad), jnp.float32),
        in_specs=[vmem] * (1 + len(flat)),
        out_specs=vmem,
    )(x_pad, *flat)

    return out[:n, :channel_out]


# --------------------------- parameter utilities ---------------------------- #
def _fold_bn_into_linear(w, b, gamma, beta, rmean, rvar):
    """Fold Linear bias + eval-mode BatchNorm1d into (W*scale, shift)."""
    scale = gamma / jnp.sqrt(rvar + BN_EPS)
    w_folded = w * scale[None, :]
    shift = beta + (b - rmean) * scale
    return w_folded, shift


def _init_linear(key, fan_in, fan_out):
    kw, kb = jax.random.split(key)
    w = jax.random.normal(kw, (fan_in, fan_out), jnp.float32) * 0.05
    b = jax.random.normal(kb, (fan_out,), jnp.float32) * 0.05
    return w, b


def _init_bn(key, f):
    k1, k2, k3, k4 = jax.random.split(key, 4)
    gamma = 1.0 + 0.1 * jax.random.normal(k1, (f,), jnp.float32)
    beta = 0.1 * jax.random.normal(k2, (f,), jnp.float32)
    rmean = 0.1 * jax.random.normal(k3, (f,), jnp.float32)
    rvar = 0.5 + 0.5 * jnp.abs(jax.random.normal(k4, (f,), jnp.float32))
    return gamma, beta, rmean, rvar


def init_fcblock_params(key, channel_in, channel_out, linear_size, block_num):
    """Returns BN-folded (unpadded) params: each layer is (W_folded, shift)."""
    keys = jax.random.split(key, 2 + 4 * block_num + 1)
    params = {}

    w, b = _init_linear(keys[0], channel_in, linear_size)
    params["fc1"] = _fold_bn_into_linear(w, b, *_init_bn(keys[1], linear_size))

    blocks = []
    for i in range(block_num):
        k0, k1, k2, k3 = keys[2 + 4 * i: 2 + 4 * (i + 1)]
        w1, b1 = _init_linear(k0, linear_size, linear_size)
        l1 = _fold_bn_into_linear(w1, b1, *_init_bn(k1, linear_size))
        w2, b2 = _init_linear(k2, linear_size, linear_size)
        l2 = _fold_bn_into_linear(w2, b2, *_init_bn(k3, linear_size))
        blocks.append((l1, l2))
    params["blocks"] = blocks

    w2, b2 = _init_linear(keys[-1], linear_size, channel_out)
    params["fc2"] = (w2, b2)  # no BN on fc_2
    return params


def pad_params(params):
    """Zero-pad every weight / shift so feature dims are 128-lane dense."""

    def pad_layer(w, sh):
        ki, ko = w.shape
        kp, op = _round_up(ki, LANE), _round_up(ko, LANE)
        wp = jnp.zeros((kp, op), jnp.float32).at[:ki, :ko].set(w)
        shp = jnp.zeros((1, op), jnp.float32).at[0, :ko].set(sh)
        return wp, shp

    return {
        "fc1": pad_layer(*params["fc1"]),
        "blocks": [(pad_layer(*l1), pad_layer(*l2)) for l1, l2 in params["blocks"]],
        "fc2": pad_layer(*params["fc2"]),
    }


# ------------------------------ reference ----------------------------------- #
def fcblock_forward_ref(x, params):
    """Pure-JAX reference with the same folded-BN eval semantics."""

    def lrelu(v):
        return jnp.where(v >= 0.0, v, NEG_SLOPE * v)

    w, sh = params["fc1"]
    h = lrelu(x @ w + sh)
    for (w1, sh1), (w2, sh2) in params["blocks"]:
        y = lrelu(h @ w1 + sh1)
        y = lrelu(y @ w2 + sh2)
        h = h + y
    w, sh = params["fc2"]
    return h @ w + sh


# ----------------------------------- main ------------------------------------ #
if __name__ == "__main__":
    channel_in, channel_out = 32, 24
    linear_size, block_num = 64, 2
    batch = 8

    key = jax.random.PRNGKey(0)
    k_params, k_x = jax.random.split(key)
    params = init_fcblock_params(k_params, channel_in, channel_out,
                                 linear_size, block_num)
    padded = pad_params(params)
    x = jax.random.normal(k_x, (batch, channel_in), jnp.float32)

    out = fcblock_forward_pallas(x, padded, block_num=block_num,
                                 channel_out=channel_out)
    out = jax.block_until_ready(out)

    ref = fcblock_forward_ref(x, params)
    assert out.shape == (batch, channel_out), out.shape
    max_err = float(jnp.max(jnp.abs(out - ref)))
    assert jnp.allclose(out, ref, atol=1e-4, rtol=1e-4), max_err

    print("KERNEL_OK")
</pallas_src>

<mosaic_0001>
module attributes {stable_mosaic.version = 11 : i64} {
  func.func @kernel(%arg0: memref<8x128xf32, #tpu.memory_space<vmem>>, %arg1: memref<128x128xf32, #tpu.memory_space<vmem>>, %arg2: memref<1x128xf32, #tpu.memory_space<vmem>>, %arg3: memref<128x128xf32, #tpu.memory_space<vmem>>, %arg4: memref<1x128xf32, #tpu.memory_space<vmem>>, %arg5: memref<128x128xf32, #tpu.memory_space<vmem>>, %arg6: memref<1x128xf32, #tpu.memory_space<vmem>>, %arg7: memref<128x128xf32, #tpu.memory_space<vmem>>, %arg8: memref<1x128xf32, #tpu.memory_space<vmem>>, %arg9: memref<128x128xf32, #tpu.memory_space<vmem>>, %arg10: memref<1x128xf32, #tpu.memory_space<vmem>>, %arg11: memref<128x128xf32, #tpu.memory_space<vmem>>, %arg12: memref<1x128xf32, #tpu.memory_space<vmem>>, %arg13: memref<8x128xf32, #tpu.memory_space<vmem>>) attributes {dimension_semantics = [], scalar_prefetch = 0 : i64, scratch_operands = 0 : i64, tpu.core_type = #tpu.core_type<tc>} {
    %c0 = arith.constant 0 : index
    %c0_0 = arith.constant 0 : index
    %0 = vector.load %arg0[%c0, %c0_0] : memref<8x128xf32, #tpu.memory_space<vmem>>, vector<8x128xf32>
    %c0_1 = arith.constant 0 : index
    %c0_2 = arith.constant 0 : index
    %1 = vector.load %arg1[%c0_1, %c0_2] : memref<128x128xf32, #tpu.memory_space<vmem>>, vector<128x128xf32>
    %cst = arith.constant dense<0.000000e+00> : vector<8x128xf32>
    %2 = tpu.matmul %0, %1, %cst {dimension_numbers = #tpu.dot_dimension_numbers<[1], [0], [0], [1], [0, 0, 1, 1], [], []>} : vector<8x128xf32>, vector<128x128xf32>, vector<8x128xf32> -> vector<8x128xf32>
    %c0_3 = arith.constant 0 : index
    %c0_4 = arith.constant 0 : index
    %3 = vector.load %arg2[%c0_3, %c0_4] : memref<1x128xf32, #tpu.memory_space<vmem>>, vector<1x128xf32>
    %4 = vector.broadcast %3 : vector<1x128xf32> to vector<8x128xf32>
    %5 = arith.addf %2, %4 : vector<8x128xf32>
    %cst_5 = arith.constant 0.000000e+00 : f32
    %6 = vector.broadcast %cst_5 : f32 to vector<8x128xf32>
    %7 = arith.cmpf oge, %5, %6 : vector<8x128xf32>
    %cst_6 = arith.constant 2.000000e-01 : f32
    %8 = vector.broadcast %cst_6 : f32 to vector<8x128xf32>
    %9 = arith.mulf %8, %5 : vector<8x128xf32>
    %10 = arith.select %7, %5, %9 : vector<8x128xi1>, vector<8x128xf32>
    %c0_7 = arith.constant 0 : index
    %c0_8 = arith.constant 0 : index
    %11 = vector.load %arg3[%c0_7, %c0_8] : memref<128x128xf32, #tpu.memory_space<vmem>>, vector<128x128xf32>
    %cst_9 = arith.constant dense<0.000000e+00> : vector<8x128xf32>
    %12 = tpu.matmul %10, %11, %cst_9 {dimension_numbers = #tpu.dot_dimension_numbers<[1], [0], [0], [1], [0, 0, 1, 1], [], []>} : vector<8x128xf32>, vector<128x128xf32>, vector<8x128xf32> -> vector<8x128xf32>
    %c0_10 = arith.constant 0 : index
    %c0_11 = arith.constant 0 : index
    %13 = vector.load %arg4[%c0_10, %c0_11] : memref<1x128xf32, #tpu.memory_space<vmem>>, vector<1x128xf32>
    %14 = vector.broadcast %13 : vector<1x128xf32> to vector<8x128xf32>
    %15 = arith.addf %12, %14 : vector<8x128xf32>
    %cst_12 = arith.constant 0.000000e+00 : f32
    %16 = vector.broadcast %cst_12 : f32 to vector<8x128xf32>
    %17 = arith.cmpf oge, %15, %16 : vector<8x128xf32>
    %cst_13 = arith.constant 2.000000e-01 : f32
    %18 = vector.broadcast %cst_13 : f32 to vector<8x128xf32>
    %19 = arith.mulf %18, %15 : vector<8x128xf32>
    %20 = arith.select %17, %15, %19 : vector<8x128xi1>, vector<8x128xf32>
    %c0_14 = arith.constant 0 : index
    %c0_15 = arith.constant 0 : index
    %21 = vector.load %arg5[%c0_14, %c0_15] : memref<128x128xf32, #tpu.memory_space<vmem>>, vector<128x128xf32>
    %cst_16 = arith.constant dense<0.000000e+00> : vector<8x128xf32>
    %22 = tpu.matmul %20, %21, %cst_16 {dimension_numbers = #tpu.dot_dimension_numbers<[1], [0], [0], [1], [0, 0, 1, 1], [], []>} : vector<8x128xf32>, vector<128x128xf32>, vector<8x128xf32> -> vector<8x128xf32>
    %c0_17 = arith.constant 0 : index
    %c0_18 = arith.constant 0 : index
    %23 = vector.load %arg6[%c0_17, %c0_18] : memref<1x128xf32, #tpu.memory_space<vmem>>, vector<1x128xf32>
    %24 = vector.broadcast %23 : vector<1x128xf32> to vector<8x128xf32>
    %25 = arith.addf %22, %24 : vector<8x128xf32>
    %cst_19 = arith.constant 0.000000e+00 : f32
    %26 = vector.broadcast %cst_19 : f32 to vector<8x128xf32>
    %27 = arith.cmpf oge, %25, %26 : vector<8x128xf32>
    %cst_20 = arith.constant 2.000000e-01 : f32
    %28 = vector.broadcast %cst_20 : f32 to vector<8x128xf32>
    %29 = arith.mulf %28, %25 : vector<8x128xf32>
    %30 = arith.select %27, %25, %29 : vector<8x128xi1>, vector<8x128xf32>
    %31 = arith.addf %10, %30 : vector<8x128xf32>
    %c0_21 = arith.constant 0 : index
    %c0_22 = arith.constant 0 : index
    %32 = vector.load %arg7[%c0_21, %c0_22] : memref<128x128xf32, #tpu.memory_space<vmem>>, vector<128x128xf32>
    %cst_23 = arith.constant dense<0.000000e+00> : vector<8x128xf32>
    %33 = tpu.matmul %31, %32, %cst_23 {dimension_numbers = #tpu.dot_dimension_numbers<[1], [0], [0], [1], [0, 0, 1, 1], [], []>} : vector<8x128xf32>, vector<128x128xf32>, vector<8x128xf32> -> vector<8x128xf32>
    %c0_24 = arith.constant 0 : index
    %c0_25 = arith.constant 0 : index
    %34 = vector.load %arg8[%c0_24, %c0_25] : memref<1x128xf32, #tpu.memory_space<vmem>>, vector<1x128xf32>
    %35 = vector.broadcast %34 : vector<1x128xf32> to vector<8x128xf32>
    %36 = arith.addf %33, %35 : vector<8x128xf32>
    %cst_26 = arith.constant 0.000000e+00 : f32
    %37 = vector.broadcast %cst_26 : f32 to vector<8x128xf32>
    %38 = arith.cmpf oge, %36, %37 : vector<8x128xf32>
    %cst_27 = arith.constant 2.000000e-01 : f32
    %39 = vector.broadcast %cst_27 : f32 to vector<8x128xf32>
    %40 = arith.mulf %39, %36 : vector<8x128xf32>
    %41 = arith.select %38, %36, %40 : vector<8x128xi1>, vector<8x128xf32>
    %c0_28 = arith.constant 0 : index
    %c0_29 = arith.constant 0 : index
    %42 = vector.load %arg9[%c0_28, %c0_29] : memref<128x128xf32, #tpu.memory_space<vmem>>, vector<128x128xf32>
    %cst_30 = arith.constant dense<0.000000e+00> : vector<8x128xf32>
    %43 = tpu.matmul %41, %42, %cst_30 {dimension_numbers = #tpu.dot_dimension_numbers<[1], [0], [0], [1], [0, 0, 1, 1], [], []>} : vector<8x128xf32>, vector<128x128xf32>, vector<8x128xf32> -> vector<8x128xf32>
    %c0_31 = arith.constant 0 : index
    %c0_32 = arith.constant 0 : index
    %44 = vector.load %arg10[%c0_31, %c0_32] : memref<1x128xf32, #tpu.memory_space<vmem>>, vector<1x128xf32>
    %45 = vector.broadcast %44 : vector<1x128xf32> to vector<8x128xf32>
    %46 = arith.addf %43, %45 : vector<8x128xf32>
    %cst_33 = arith.constant 0.000000e+00 : f32
    %47 = vector.broadcast %cst_33 : f32 to vector<8x128xf32>
    %48 = arith.cmpf oge, %46, %47 : vector<8x128xf32>
    %cst_34 = arith.constant 2.000000e-01 : f32
    %49 = vector.broadcast %cst_34 : f32 to vector<8x128xf32>
    %50 = arith.mulf %49, %46 : vector<8x128xf32>
    %51 = arith.select %48, %46, %50 : vector<8x128xi1>, vector<8x128xf32>
    %52 = arith.addf %31, %51 : vector<8x128xf32>
    %c0_35 = arith.constant 0 : index
    %c0_36 = arith.constant 0 : index
    %53 = vector.load %arg11[%c0_35, %c0_36] : memref<128x128xf32, #tpu.memory_space<vmem>>, vector<128x128xf32>
    %cst_37 = arith.constant dense<0.000000e+00> : vector<8x128xf32>
    %54 = tpu.matmul %52, %53, %cst_37 {dimension_numbers = #tpu.dot_dimension_numbers<[1], [0], [0], [1], [0, 0, 1, 1], [], []>} : vector<8x128xf32>, vector<128x128xf32>, vector<8x128xf32> -> vector<8x128xf32>
    %c0_38 = arith.constant 0 : index
    %c0_39 = arith.constant 0 : index
    %55 = vector.load %arg12[%c0_38, %c0_39] : memref<1x128xf32, #tpu.memory_space<vmem>>, vector<1x128xf32>
    %56 = vector.broadcast %55 : vector<1x128xf32> to vector<8x128xf32>
    %57 = arith.addf %54, %56 : vector<8x128xf32>
    %c0_40 = arith.constant 0 : index
    %c0_41 = arith.constant 0 : index
    %58 = vector.load %arg13[%c0_40, %c0_41] : memref<8x128xf32, #tpu.memory_space<vmem>>, vector<8x128xf32>
    tpu.vector_store %arg13[%c0_40, %c0_41], %57 {strides = array<i32>} : memref<8x128xf32, #tpu.memory_space<vmem>>, vector<8x128xf32>,
    return
  }
}

</mosaic_0001>

<bundles_post_ra>
// kernel: fcblock_forward_pallas.1
= control target key start
LH: loop header
LB: loop body
LE: loop exit
PB: predicated region body
PF: predicated region fallthrough
CT: control target
= control target key end

     0   :  { %18 = vsyncpa [#allocation3], 0  ;;  %s1650_s0 = inlined_call_operand.vmem [shape: f32[8,128], index: 0, kind: input, shape index: {}]   ;;  %s1651_s1 = inlined_call_operand.hbm [shape: f32[128,128], index: 1, kind: input, shape index: {}]   ;;  %s1652_s2 = inlined_call_operand.vmem [shape: f32[1,128], index: 2, kind: input, shape index: {}]   ;;  %s1653_s3 = inlined_call_operand.hbm [shape: f32[128,128], index: 3, kind: input, shape index: {}]   ;;  %s1654_s4 = inlined_call_operand.vmem [shape: f32[1,128], index: 4, kind: input, shape index: {}]   ;;  %s1655_s5 = inlined_call_operand.hbm [shape: f32[128,128], index: 5, kind: input, shape index: {}]   ;;  %s1656_s6 = inlined_call_operand.vmem [shape: f32[1,128], index: 6, kind: input, shape index: {}]   ;;  %s1657_s7 = inlined_call_operand.hbm [shape: f32[128,128], index: 7, kind: input, shape index: {}]   ;;  %s1658_s8 = inlined_call_operand.vmem [shape: f32[1,128], index: 8, kind: input, shape index: {}]   ;;  %s1659_s9 = inlined_call_operand.hbm [shape: f32[128,128], index: 9, kind: input, shape index: {}]   ;;  %s1660_s10 = inlined_call_operand.vmem [shape: f32[1,128], index: 10, kind: input, shape index: {}]   ;;  %s1661_s11 = inlined_call_operand.hbm [shape: f32[128,128], index: 11, kind: input, shape index: {}]   ;;  %s1662_s12 = inlined_call_operand.vmem [shape: f32[1,128], index: 12, kind: input, shape index: {}]   ;;  %s1663_s13 = inlined_call_operand.hbm [shape: f32[8,128], index: 13, kind: output, shape index: {}]  }
   0x1   :  { %19 = vsyncpa [#allocation6], 0 }
   0x2   :  { %20 = vsyncpa [#allocation9], 0 }
   0x3   :  { %21 = vsyncpa [#allocation12], 0 }
   0x4   :  { %22 = vsyncpa [#allocation4], 0  ;;  %s1360_s25 = smov [#allocation5]   ;;  %s1361_s27 = smov [#allocation8]  }
   0x5   :  { %s44_s26 = sshll.u32 %s1360_s25, 4  ;;  %s72_s28 = sshll.u32 %s1361_s27, 4  ;;  %s45_s26 = int_to_ptr.vmem [resolvable:$true] %s44_s26  ;;  %s1442_s28 = int_to_ptr.vmem [resolvable:$true] %s72_s28 }
   0x6   :  { %s1196_s14 = scalar_lea.hbm %s1653_s3, 2048 }
   0x7   :  { %p1197_p0 = scmp.ne.s32.totalorder %s1653_s3, %s1196_s14  ;;  %p1200_p1 = scmp.lt.u32.totalorder %s1196_s14, %s1653_s3 }
   0x9   :  { %p1202_p2 = pnand %p1200_p1, %p1197_p0 }
   0xb   :  { %1205 = shalt.err (!%p1202_p2)
}
   0xc   :  { %s1206_s19 = scalar_lea.vmem %s45_s26, 2048  ;;  %p1211_p4 = scmp.lt.s32.totalorder %s45_s26, %s45_s26 }
   0xd   :  { %p1207_p3 = scmp.ne.s32.totalorder %s45_s26, %s1206_s19  ;;  %p1212_p5 = scmp.lt.s32.totalorder %s1206_s19, %s1206_s19 }
   0xf   :  { %p1213_p6 = por %p1212_p5, %p1211_p4 }
  0x11   :  { %p1214_p7 = pnand %p1213_p6, %p1207_p3 }
  0x13   :  { %1217 = shalt.err (!%p1214_p7)
}
  0x14   :  { %s1362_s20 = smov 128   ;;  %s1363_s21 = smov 8  }
  0x15   :  { %50 = dma.hbm_to_vmem [thread:$0]  %s1653_s3, 2048, %s45_s26, [#allocation6], %s1362_s20, %s1362_s20, %s1363_s21  }
  0x16   :  { %s1218_s27 = scalar_lea.hbm %s1657_s7, 2048 }
  0x17   :  { %p1219_p8 = scmp.ne.s32.totalorder %s1657_s7, %s1218_s27  ;;  %p1222_p9 = scmp.lt.u32.totalorder %s1218_s27, %s1657_s7 }
  0x19   :  { %p1224_p10 = pnand %p1222_p9, %p1219_p8 }
  0x1b   :  { %1227 = shalt.err (!%p1224_p10)
}
  0x1c   :  { %s1228_s16 = scalar_lea.vmem %s1442_s28, 2048  ;;  %p1233_p12 = scmp.lt.s32.totalorder %s1442_s28, %s1442_s28 }
  0x1d   :  { %p1229_p11 = scmp.ne.s32.totalorder %s1442_s28, %s1228_s16  ;;  %p1234_p13 = scmp.lt.s32.totalorder %s1228_s16, %s1228_s16 }
  0x1f   :  { %p1235_p0 = por %p1234_p13, %p1233_p12 }
  0x21   :  { %p1236_p1 = pnand %p1235_p0, %p1229_p11 }
  0x23   :  { %1239 = shalt.err (!%p1236_p1)
}
  0x24   :  { %78 = dma.hbm_to_vmem [thread:$0]  %s1657_s7, 2048, %s1442_s28, [#allocation9], %s1362_s20, %s1362_s20, %s1363_s21  }
  0x25   :  { %s1364_s17 = smov [#allocation2]   ;;  %s1365_s19 = smov [#allocation7]  }
  0x26   :  { %s30_s18 = sshll.u32 %s1364_s17, 4  ;;  %s58_s22 = sshll.u32 %s1365_s19, 4  ;;  %s31_s18 = int_to_ptr.vmem [resolvable:$true] %s30_s18  ;;  %s1479_s22 = int_to_ptr.vmem [resolvable:$true] %s58_s22 }
  0x27   :  { %s1240_s25 = scalar_lea.hbm %s1651_s1, 2048 }
  0x28   :  { %p1241_p2 = scmp.ne.s32.totalorder %s1651_s1, %s1240_s25  ;;  %p1244_p3 = scmp.lt.u32.totalorder %s1240_s25, %s1651_s1 }
  0x2a   :  { %p1246_p4 = pnand %p1244_p3, %p1241_p2 }
  0x2c   :  { %1249 = shalt.err (!%p1246_p4)
}
  0x2d   :  { %s1250_s7 = scalar_lea.vmem %s31_s18, 2048  ;;  %p1255_p6 = scmp.lt.s32.totalorder %s31_s18, %s31_s18 }
  0x2e   :  { %p1251_p5 = scmp.ne.s32.totalorder %s31_s18, %s1250_s7  ;;  %p1256_p7 = scmp.lt.s32.totalorder %s1250_s7, %s1250_s7 }
  0x30   :  { %p1257_p8 = por %p1256_p7, %p1255_p6 }
  0x32   :  { %p1258_p9 = pnand %p1257_p8, %p1251_p5 }
  0x34   :  { %1261 = shalt.err (!%p1258_p9)
}
  0x35   :  { %36 = dma.hbm_to_vmem [thread:$0]  %s1651_s1, 2048, %s31_s18, [#allocation3], %s1362_s20, %s1362_s20, %s1363_s21  }
  0x36   :  { %s1262_s26 = scalar_lea.hbm %s1655_s5, 2048 }
  0x37   :  { %p1263_p10 = scmp.ne.s32.totalorder %s1655_s5, %s1262_s26  ;;  %p1266_p11 = scmp.lt.u32.totalorder %s1262_s26, %s1655_s5 }
  0x39   :  { %p1268_p12 = pnand %p1266_p11, %p1263_p10 }
  0x3b   :  { %1271 = shalt.err (!%p1268_p12)
}
  0x3c   :  { %s1272_s25 = scalar_lea.vmem %s1479_s22, 2048  ;;  %p1277_p0 = scmp.lt.s32.totalorder %s1479_s22, %s1479_s22 }
  0x3d   :  { %p1273_p13 = scmp.ne.s32.totalorder %s1479_s22, %s1272_s25  ;;  %p1278_p1 = scmp.lt.s32.totalorder %s1272_s25, %s1272_s25 }
  0x3f   :  { %p1279_p2 = por %p1278_p1, %p1277_p0 }
  0x41   :  { %p1280_p3 = pnand %p1279_p2, %p1273_p13 }
  0x43   :  { %1283 = shalt.err (!%p1280_p3)
}
  0x44   :  { %64 = dma.hbm_to_vmem [thread:$0]  %s1655_s5, 2048, %s1479_s22, [#allocation6], %s1362_s20, %s1362_s20, %s1363_s21  }
  0x45   :  { %s1366_s27 = smov [#allocation10]   ;;  %s1367_s30 = smov [#allocation11]  }
  0x46   :  { %s86_s29 = sshll.u32 %s1366_s27, 4  ;;  %s100_s14 = sshll.u32 %s1367_s30, 4  ;;  %s87_s29 = int_to_ptr.vmem [resolvable:$true] %s86_s29  ;;  %s1516_s14 = int_to_ptr.vmem [resolvable:$true] %s100_s14 }
  0x47   :  { %s1284_s15 = scalar_lea.hbm %s1659_s9, 2048 }
  0x48   :  { %p1285_p4 = scmp.ne.s32.totalorder %s1659_s9, %s1284_s15  ;;  %p1288_p5 = scmp.lt.u32.totalorder %s1284_s15, %s1659_s9 }
  0x4a   :  { %p1290_p6 = pnand %p1288_p5, %p1285_p4 }
  0x4c   :  { %1293 = shalt.err (!%p1290_p6)
}
  0x4d   :  { %s1294_s5 = scalar_lea.vmem %s87_s29, 2048  ;;  %p1299_p8 = scmp.lt.s32.totalorder %s87_s29, %s87_s29 }
  0x4e   :  { %p1295_p7 = scmp.ne.s32.totalorder %s87_s29, %s1294_s5  ;;  %p1300_p9 = scmp.lt.s32.totalorder %s1294_s5, %s1294_s5 }
  0x50   :  { %p1301_p10 = por %p1300_p9, %p1299_p8 }
  0x52   :  { %p1302_p11 = pnand %p1301_p10, %p1295_p7 }
  0x54   :  { %1305 = shalt.err (!%p1302_p11)
}
  0x55   :  { %92 = dma.hbm_to_vmem [thread:$0]  %s1659_s9, 2048, %s87_s29, [#allocation9], %s1362_s20, %s1362_s20, %s1363_s21  }
  0x56   :  { %s1306_s25 = scalar_lea.hbm %s1661_s11, 2048 }
  0x57   :  { %p1307_p12 = scmp.ne.s32.totalorder %s1661_s11, %s1306_s25  ;;  %p1310_p13 = scmp.lt.u32.totalorder %s1306_s25, %s1661_s11 }
  0x59   :  { %p1312_p0 = pnand %p1310_p13, %p1307_p12 }
  0x5b   :  { %1315 = shalt.err (!%p1312_p0)
}
  0x5c   :  { %s1316_s7 = scalar_lea.vmem %s1516_s14, 2048  ;;  %p1321_p2 = scmp.lt.s32.totalorder %s1516_s14, %s1516_s14 }
  0x5d   :  { %p1317_p1 = scmp.ne.s32.totalorder %s1516_s14, %s1316_s7  ;;  %p1322_p3 = scmp.lt.s32.totalorder %s1316_s7, %s1316_s7 }
  0x5f   :  { %p1323_p4 = por %p1322_p3, %p1321_p2 }
  0x61   :  { %p1324_p5 = pnand %p1323_p4, %p1317_p1 }
  0x63   :  { %1327 = shalt.err (!%p1324_p5)
}
  0x64   :  { %106 = dma.hbm_to_vmem [thread:$0]  %s1661_s11, 2048, %s1516_s14, [#allocation12], %s1362_s20, %s1362_s20, %s1363_s21  }
  0x65   :  { %1350 = dma.done.wait [#allocation3], 2048  }
  0x66   :  { %1351 = vsyncadd [#allocation3], 4294965248 }
  0x67   :  { %1352 = dma.done.wait [#allocation6], 4096  }
  0x68   :  { %1353 = vsyncadd [#allocation6], 4294963200 }
  0x69   :  { %1354 = dma.done.wait [#allocation9], 4096  }
  0x6a   :  { %1355 = vsyncadd [#allocation9], 4294963200 }
  0x6b   :  { %1356 = dma.done.wait [#allocation12], 2048  }
  0x6c   :  { %1357 = vsyncadd [#allocation12], 4294965248  ;;  %v1368_v0 = vmov 0.0|0.0   ;;  %vm1369_vm0 = vmmov 0   ;;  %v1370_v1 = vmov 0.0   ;;  %v128_v2 = vld [vmem:[#allocation2] sm:$0xff] }
  0x6d   :  { %1040 = vmatprep.subr.bf16.mxu0 %v1368_v0  ;;  %862 = vmatprep.mubr.msk.f32.mxu0 %vm1369_vm0, %v1370_v1  ;;  %v129_v3 = vld [vmem:[#allocation2 + $0x8] sm:$0xff]  ;;  %v130_v4 = vld [vmem:[#allocation2 + $0x10] sm:$0xff]  ;;  %v131_v6 = vld [vmem:[#allocation2 + $0x18] sm:$0xff]  ;;  %s1371_s17 = smov [#allocation13]  }
  0x6e   :  { %1064 = vmatprep.subr.bf16.mxu1 %v1368_v0  ;;  %897 = vmatprep.mubr.msk.f32.mxu1 %vm1369_vm0, %v1370_v1  ;;  %v1041_v5 = vpack.c.bf16 %v129_v3, %v128_v2  ;;  %v1044_v7 = vpack.c.bf16 %v131_v6, %v130_v4  ;;  %v132_v8 = vld [vmem:[#allocation2 + $0x20] sm:$0xff]  ;;  %v133_v9 = vld [vmem:[#allocation2 + $0x28] sm:$0xff]  ;;  %v226_v12 = vld [vmem:[#allocation5 + $0x10] sm:$0xff]  ;;  %s710_s5 = sshll.u32 %s1371_s17, 4  ;;  %s711_s5 = int_to_ptr.vmem [resolvable:$true] %s710_s5 }
  0x6f   :  { %v224_v10 = vld [vmem:[#allocation5] sm:$0xff]  ;;  %v225_v11 = vld [vmem:[#allocation5 + $0x8] sm:$0xff]  ;;  %v227_v13 = vld [vmem:[#allocation5 + $0x18] sm:$0xff]  ;;  %v1047_v14 = vpack.c.bf16 %v133_v9, %v132_v8  ;;  %p1333_p7 = scmp.lt.s32.totalorder %s711_s5, %s711_s5 }
  0x70   :  { %1042 = vmatpush3.bf16.msra.mxu0 %v1041_v5  ;;  %v1065_v15 = vpack.c.bf16 %v225_v11, %v224_v10  ;;  %v134_v16 = vld [vmem:[#allocation2 + $0x30] sm:$0xff]  ;;  %v135_v17 = vld [vmem:[#allocation2 + $0x38] sm:$0xff]  ;;  %v1068_v18 = vpack.c.bf16 %v227_v13, %v226_v12  ;;  %v228_v19 = vld [vmem:[#allocation5 + $0x20] sm:$0xff] }
  0x71   :  { %1043 = vmatprep.subr.bf16.mxu0 %v1368_v0  ;;  %v229_v20 = vld [vmem:[#allocation5 + $0x28] sm:$0xff]  ;;  %v1050_v21 = vpack.c.bf16 %v135_v17, %v134_v16  ;;  %v136_v22 = vld [vmem:[#allocation2 + $0x40] sm:$0xff]  ;;  %v230_v25 = vld [vmem:[#allocation5 + $0x30] sm:$0xff] }
  0x72   :  { %1066 = vmatpush3.bf16.msra.mxu1 %v1065_v15  ;;  %v137_v23 = vld [vmem:[#allocation2 + $0x48] sm:$0xff]  ;;  %v1071_v24 = vpack.c.bf16 %v229_v20, %v228_v19  ;;  %v231_v26 = vld [vmem:[#allocation5 + $0x38] sm:$0xff]  ;;  %v138_v28 = vld [vmem:[#allocation2 + $0x50] sm:$0xff] }
  0x73   :  { %1067 = vmatprep.subr.bf16.mxu1 %v1368_v0  ;;  %v1053_v27 = vpack.c.bf16 %v137_v23, %v136_v22  ;;  %v139_v29 = vld [vmem:[#allocation2 + $0x58] sm:$0xff]  ;;  %v1074_v30 = vpack.c.bf16 %v231_v26, %v230_v25  ;;  %v232_v31 = vld [vmem:[#allocation5 + $0x40] sm:$0xff]  ;;  %v233_v32 = vld [vmem:[#allocation5 + $0x48] sm:$0xff] }
  0x74   :  { %1045 = vmatpush3.bf16.msra.mxu0 %v1044_v7  ;;  %v1056_v33 = vpack.c.bf16 %v139_v29, %v138_v28  ;;  %v140_v34 = vld [vmem:[#allocation2 + $0x60] sm:$0xff]  ;;  %v141_v35 = vld [vmem:[#allocation2 + $0x68] sm:$0xff]  ;;  %v1077_v36 = vpack.c.bf16 %v233_v32, %v232_v31  ;;  %v234_v37 = vld [vmem:[#allocation5 + $0x50] sm:$0xff] }
  0x75   :  { %1046 = vmatprep.subr.bf16.mxu0 %v1368_v0  ;;  %v235_v38 = vld [vmem:[#allocation5 + $0x58] sm:$0xff]  ;;  %v1059_v39 = vpack.c.bf16 %v141_v35, %v140_v34  ;;  %v142_v40 = vld [vmem:[#allocation2 + $0x70] sm:$0xff]  ;;  %v236_v43 = vld [vmem:[#allocation5 + $0x60] sm:$0xff] }
  0x76   :  { %1069 = vmatpush3.bf16.msra.mxu1 %v1068_v18  ;;  %v143_v41 = vld [vmem:[#allocation2 + $0x78] sm:$0xff]  ;;  %v1080_v42 = vpack.c.bf16 %v235_v38, %v234_v37  ;;  %v237_v44 = vld [vmem:[#allocation5 + $0x68] sm:$0xff]  ;;  %v127_v47 = vld [vmem:[%s1650_s0] sm:$0xff] }
  0x77   :  { %1070 = vmatprep.subr.bf16.mxu1 %v1368_v0  ;;  %v1062_v45 = vpack.c.bf16 %v143_v41, %v142_v40  ;;  %v1083_v46 = vpack.c.bf16 %v237_v44, %v236_v43  ;;  %v238_v48 = vld [vmem:[#allocation5 + $0x70] sm:$0xff]  ;;  %v239_v49 = vld [vmem:[#allocation5 + $0x78] sm:$0xff]  ;;  %v320_v51 = vld [vmem:[#allocation7] sm:$0xff] }
  0x78   :  { %1048 = vmatpush3.bf16.msra.mxu0 %v1047_v14  ;;  %v1086_v50 = vpack.c.bf16 %v239_v49, %v238_v48  ;;  %v321_v52 = vld [vmem:[#allocation7 + $0x8] sm:$0xff]  ;;  %v322_v53 = vld [vmem:[#allocation7 + $0x10] sm:$0xff]  ;;  %v323_v55 = vld [vmem:[#allocation7 + $0x18] sm:$0xff] }
  0x79   :  { %1049 = vmatprep.subr.bf16.mxu0 %v1368_v0  ;;  %v1089_v54 = vpack.c.bf16 %v321_v52, %v320_v51  ;;  %v1092_v56 = vpack.c.bf16 %v323_v55, %v322_v53  ;;  %v324_v57 = vld [vmem:[#allocation7 + $0x20] sm:$0xff]  ;;  %v325_v58 = vld [vmem:[#allocation7 + $0x28] sm:$0xff]  ;;  %v326_v60 = vld [vmem:[#allocation7 + $0x30] sm:$0xff] }
  0x7a   :  { %1072 = vmatpush3.bf16.msra.mxu1 %v1071_v24  ;;  %v1095_v59 = vpack.c.bf16 %v325_v58, %v324_v57  ;;  %v327_v61 = vld [vmem:[#allocation7 + $0x38] sm:$0xff]  ;;  %v328_v63 = vld [vmem:[#allocation7 + $0x40] sm:$0xff]  ;;  %v329_v2 = vld [vmem:[#allocation7 + $0x48] sm:$0xff] }
  0x7b   :  { %1073 = vmatprep.subr.bf16.mxu1 %v1368_v0  ;;  %v1098_v62 = vpack.c.bf16 %v327_v61, %v326_v60  ;;  %v1101_v3 = vpack.c.bf16 %v329_v2, %v328_v63  ;;  %v330_v4 = vld [vmem:[#allocation7 + $0x50] sm:$0xff]  ;;  %v331_v5 = vld [vmem:[#allocation7 + $0x58] sm:$0xff]  ;;  %v332_v7 = vld [vmem:[#allocation7 + $0x60] sm:$0xff] }
  0x7c   :  { %1051 = vmatpush3.bf16.msra.mxu0 %v1050_v21  ;;  %v1104_v6 = vpack.c.bf16 %v331_v5, %v330_v4  ;;  %v333_v8 = vld [vmem:[#allocation7 + $0x68] sm:$0xff]  ;;  %v722_v10 = vld [vmem:[%s1652_s2] ss:$0 sm:$0xff]  ;;  %v334_v16 = vld [vmem:[#allocation7 + $0x70] sm:$0xff] }
  0x7d   :  { %1052 = vmatprep.subr.bf16.mxu0 %v1368_v0  ;;  %v1107_v9 = vpack.c.bf16 %v333_v8, %v332_v7  ;;  %v335_v17 = vld [vmem:[#allocation7 + $0x78] sm:$0xff]  ;;  %v417_v19 = vld [vmem:[#allocation8] sm:$0xff]  ;;  %v418_v20 = vld [vmem:[#allocation8 + $0x8] sm:$0xff] }
  0x7e   :  { %1075 = vmatpush3.bf16.msra.mxu1 %v1074_v30  ;;  %v1110_v18 = vpack.c.bf16 %v335_v17, %v334_v16  ;;  %v419_v21 = vld [vmem:[#allocation8 + $0x10] sm:$0xff]  ;;  %v1113_v22 = vpack.c.bf16 %v418_v20, %v417_v19  ;;  %v420_v23 = vld [vmem:[#allocation8 + $0x18] sm:$0xff]  ;;  %v421_v25 = vld [vmem:[#allocation8 + $0x20] sm:$0xff] }
  0x7f   :  { %1076 = vmatprep.subr.bf16.mxu1 %v1368_v0  ;;  %v1116_v24 = vpack.c.bf16 %v420_v23, %v419_v21  ;;  %v422_v26 = vld [vmem:[#allocation8 + $0x28] sm:$0xff]  ;;  %v423_v28 = vld [vmem:[#allocation8 + $0x30] sm:$0xff]  ;;  %v424_v29 = vld [vmem:[#allocation8 + $0x38] sm:$0xff] }
  0x80   :  { %1054 = vmatpush3.bf16.msra.mxu0 %v1053_v27  ;;  %v1119_v27 = vpack.c.bf16 %v422_v26, %v421_v25  ;;  %v1122_v30 = vpack.c.bf16 %v424_v29, %v423_v28  ;;  %v425_v31 = vld [vmem:[#allocation8 + $0x40] sm:$0xff]  ;;  %v426_v32 = vld [vmem:[#allocation8 + $0x48] sm:$0xff]  ;;  %v427_v34 = vld [vmem:[#allocation8 + $0x50] sm:$0xff] }
  0x81   :  { %1055 = vmatprep.subr.bf16.mxu0 %v1368_v0  ;;  %v428_v35 = vld [vmem:[#allocation8 + $0x58] sm:$0xff]  ;;  %v723_v37 = vld [vmem:[%s1654_s4] ss:$0 sm:$0xff]  ;;  %v430_v44 = vld [vmem:[#allocation8 + $0x68] sm:$0xff] }
  0x82   :  { %1078 = vmatpush3.bf16.msra.mxu1 %v1077_v36  ;;  %v1128_v36 = vpack.c.bf16 %v428_v35, %v427_v34  ;;  %v429_v43 = vld [vmem:[#allocation8 + $0x60] sm:$0xff]  ;;  %v515_v51 = vld [vmem:[#allocation10 + $0x10] sm:$0xff]  ;;  %v516_v53 = vld [vmem:[#allocation10 + $0x18] sm:$0xff] }
  0x83   :  { %1079 = vmatprep.subr.bf16.mxu1 %v1368_v0  ;;  %v513_v49 = vld [vmem:[#allocation10] sm:$0xff]  ;;  %v519_v58 = vld [vmem:[#allocation10 + $0x30] sm:$0xff]  ;;  %v528_v17 = vld [vmem:[#allocation10 + $0x78] sm:$0xff] }
  0x84   :  { %1057 = vmatpush3.bf16.msra.mxu0 %v1056_v33  ;;  %v1125_v33 = vpack.c.bf16 %v426_v32, %v425_v31  ;;  %v517_v55 = vld [vmem:[#allocation10 + $0x20] sm:$0xff]  ;;  %v523_v2 = vld [vmem:[#allocation10 + $0x50] sm:$0xff]  ;;  %v611_v20 = vld [vmem:[#allocation11 + $0x8] sm:$0xff] }
  0x85   :  { %1058 = vmatprep.subr.bf16.mxu0 %v1368_v0  ;;  %v521_v61 = vld [vmem:[#allocation10 + $0x40] sm:$0xff]  ;;  %v527_v16 = vld [vmem:[#allocation10 + $0x70] sm:$0xff]  ;;  %v613_v23 = vld [vmem:[#allocation11 + $0x18] sm:$0xff] }
  0x86   :  { %1081 = vmatpush3.bf16.msra.mxu1 %v1080_v42  ;;  %v525_v5 = vld [vmem:[#allocation10 + $0x60] sm:$0xff]  ;;  %v612_v21 = vld [vmem:[#allocation11 + $0x10] sm:$0xff]  ;;  %v615_v26 = vld [vmem:[#allocation11 + $0x28] sm:$0xff] }
  0x87   :  { %1082 = vmatprep.subr.bf16.mxu1 %v1368_v0  ;;  %v724_v8 = vld [vmem:[%s1656_s6] ss:$0 sm:$0xff]  ;;  %v620_v32 = vld [vmem:[#allocation11 + $0x50] sm:$0xff] }
  0x88   :  { %1060 = vmatpush3.bf16.msra.mxu0 %v1059_v39  ;;  %v610_v19 = vld [vmem:[#allocation11] sm:$0xff] }
  0x89   :  { %1061 = vmatprep.subr.bf16.mxu0 %v1368_v0  ;;  %v614_v25 = vld [vmem:[#allocation11 + $0x20] sm:$0xff] }
  0x8a   :  { %1084 = vmatpush3.bf16.msra.mxu1 %v1083_v46  ;;  %v431_v46 = vld [vmem:[#allocation8 + $0x70] sm:$0xff]  ;;  %v618_v29 = vld [vmem:[#allocation11 + $0x40] sm:$0xff] }
  0x8b   :  { %1085 = vmatprep.subr.bf16.mxu1 %v1368_v0  ;;  %v725_v35 = vld [vmem:[%s1658_s8] ss:$0 sm:$0xff] }
  0x8c   :  { %1063 = vmatpush3.bf16.msra.mxu0 %v1062_v45  ;;  %v1131_v45 = vpack.c.bf16 %v430_v44, %v429_v43  ;;  %v624_v44 = vld [vmem:[#allocation11 + $0x70] sm:$0xff] }
  0x8d   :  { %1088 = vmatprep.subr.bf16.mxu0 %v1368_v0 }
  0x8e   :  { %1087 = vmatpush3.bf16.msra.mxu1 %v1086_v50  ;;  %v514_v50 = vld [vmem:[#allocation10 + $0x8] sm:$0xff] }
  0x8f   :  { %863 = vmatmul.mubr.f32.vlgmr.msra.gmra.mrb[0].mxu0 %v127_v47  ;;  %1112 = vmatprep.subr.bf16.mxu1 %v1368_v0  ;;  %v432_v47 = vld [vmem:[#allocation8 + $0x78] sm:$0xff]  ;;  %v1137_v52 = vpack.c.bf16 %v514_v50, %v513_v49 }
  0x90   :  { %932 = vmatprep.mubr.msk.f32.mxu0 %vm1369_vm0, %v1370_v1  ;;  %1090 = vmatpush3.bf16.msra.mxu0 %v1089_v54  ;;  %v1134_v48 = vpack.c.bf16 %v432_v47, %v431_v46  ;;  %v1140_v54 = vpack.c.bf16 %v516_v53, %v515_v51  ;;  %v726_v47 = vld [vmem:[%s1660_s10] ss:$0 sm:$0xff]  ;;  %s1328_s10 = scalar_lea.vmem %s711_s5, 128 }
  0x91   :  { %1091 = vmatprep.subr.bf16.mxu0 %v1368_v0  ;;  %p1329_p6 = scmp.ne.s32.totalorder %s711_s5, %s1328_s10  ;;  %p1334_p8 = scmp.lt.s32.totalorder %s1328_s10, %s1328_s10 }
  0x93   :  { %p1335_p9 = por %p1334_p8, %p1333_p7 }
  0x94   :  { %1093 = vmatpush3.bf16.msra.mxu0 %v1092_v56  ;;  %v518_v56 = vld [vmem:[#allocation10 + $0x28] sm:$0xff] }
  0x95   :  { %1094 = vmatprep.subr.bf16.mxu0 %v1368_v0  ;;  %v1143_v57 = vpack.c.bf16 %v518_v56, %v517_v55  ;;  %p1336_p10 = pnand %p1335_p9, %p1329_p6 }
  0x98   :  { %1096 = vmatpush3.bf16.msra.mxu0 %v1095_v59  ;;  %v520_v59 = vld [vmem:[#allocation10 + $0x38] sm:$0xff] }
  0x99   :  { %1097 = vmatprep.subr.bf16.mxu0 %v1368_v0  ;;  %v1146_v60 = vpack.c.bf16 %v520_v59, %v519_v58 }
  0x9c   :  { %1099 = vmatpush3.bf16.msra.mxu0 %v1098_v62  ;;  %v522_v62 = vld [vmem:[#allocation10 + $0x48] sm:$0xff] }
  0x9d   :  { %1100 = vmatprep.subr.bf16.mxu0 %v1368_v0  ;;  %v1149_v63 = vpack.c.bf16 %v522_v62, %v521_v61 }
  0xa0   :  { %1102 = vmatpush3.bf16.msra.mxu0 %v1101_v3  ;;  %v524_v3 = vld [vmem:[#allocation10 + $0x58] sm:$0xff] }
  0xa1   :  { %1103 = vmatprep.subr.bf16.mxu0 %v1368_v0  ;;  %v1152_v4 = vpack.c.bf16 %v524_v3, %v523_v2 }
  0xa4   :  { %1105 = vmatpush3.bf16.msra.mxu0 %v1104_v6  ;;  %v526_v6 = vld [vmem:[#allocation10 + $0x68] sm:$0xff] }
  0xa5   :  { %1106 = vmatprep.subr.bf16.mxu0 %v1368_v0  ;;  %v1155_v7 = vpack.c.bf16 %v526_v6, %v525_v5 }
  0xa8   :  { %1108 = vmatpush3.bf16.msra.mxu0 %v1107_v9 }
  0xa9   :  { %1109 = vmatprep.subr.bf16.mxu0 %v1368_v0 }
  0xac   :  { %1111 = vmatpush3.bf16.msra.mxu0 %v1110_v18  ;;  %v1158_v18 = vpack.c.bf16 %v528_v17, %v527_v16 }
  0xad   :  { %1136 = vmatprep.subr.bf16.mxu0 %v1368_v0 }
 0x162   :  { %v217_v11 = vpop.f32.mrb[0].mxu0 }
 0x163   :  { %v218_v12 = vadd.f32 %v722_v10, %v217_v11  ;;  %v864_v13 = vpop.f32.mrb[1].mxu0 }
 0x165   :  { %v222_v14 = vmul.f32 0.2, %v218_v12  ;;  %vm221_vm1 = vcmp.ge.f32.partialorder %v218_v12, 0.0 }
 0x167   :  { %v1590_v15 = vsel %vm221_vm1, %v218_v12, %v222_v14 }
 0x168   :  { %898 = vmatmul.mubr.f32.vlgmr.msra.gmra.mrb[0].mxu1 %v1590_v15 }
 0x169   :  { %967 = vmatprep.mubr.msk.f32.mxu1 %vm1369_vm0, %v1370_v1  ;;  %1114 = vmatpush3.bf16.msra.mxu1 %v1113_v22  ;;  %v1161_v22 = vpack.c.bf16 %v611_v20, %v610_v19 }
 0x16a   :  { %1115 = vmatprep.subr.bf16.mxu1 %v1368_v0 }
 0x16d   :  { %1117 = vmatpush3.bf16.msra.mxu1 %v1116_v24  ;;  %v1164_v24 = vpack.c.bf16 %v613_v23, %v612_v21 }
 0x16e   :  { %1118 = vmatprep.subr.bf16.mxu1 %v1368_v0 }
 0x171   :  { %1120 = vmatpush3.bf16.msra.mxu1 %v1119_v27  ;;  %v617_v27 = vld [vmem:[#allocation11 + $0x38] sm:$0xff] }
 0x172   :  { %1121 = vmatprep.subr.bf16.mxu1 %v1368_v0 }
 0x175   :  { %1123 = vmatpush3.bf16.msra.mxu1 %v1122_v30  ;;  %v619_v30 = vld [vmem:[#allocation11 + $0x48] sm:$0xff] }
 0x176   :  { %1124 = vmatprep.subr.bf16.mxu1 %v1368_v0  ;;  %v1173_v31 = vpack.c.bf16 %v619_v30, %v618_v29 }
 0x179   :  { %1126 = vmatpush3.bf16.msra.mxu1 %v1125_v33  ;;  %v621_v33 = vld [vmem:[#allocation11 + $0x58] sm:$0xff] }
 0x17a   :  { %1127 = vmatprep.subr.bf16.mxu1 %v1368_v0  ;;  %v1176_v34 = vpack.c.bf16 %v621_v33, %v620_v32 }
 0x17d   :  { %1129 = vmatpush3.bf16.msra.mxu1 %v1128_v36 }
 0x17e   :  { %1130 = vmatprep.subr.bf16.mxu1 %v1368_v0 }
 0x181   :  { %1132 = vmatpush3.bf16.msra.mxu1 %v1131_v45  ;;  %v625_v45 = vld [vmem:[#allocation11 + $0x78] sm:$0xff] }
 0x182   :  { %1133 = vmatprep.subr.bf16.mxu1 %v1368_v0  ;;  %v1182_v46 = vpack.c.bf16 %v625_v45, %v624_v44 }
 0x185   :  { %1135 = vmatpush3.bf16.msra.mxu1 %v1134_v48 }
 0x186   :  { %1160 = vmatprep.subr.bf16.mxu1 %v1368_v0 }
 0x23b   :  { %v313_v38 = vpop.f32.mrb[0].mxu1 }
 0x23c   :  { %v314_v39 = vadd.f32 %v723_v37, %v313_v38  ;;  %v899_v40 = vpop.f32.mrb[1].mxu1 }
 0x23e   :  { %vm317_vm2 = vcmp.ge.f32.partialorder %v314_v39, 0.0  ;;  %v318_v41 = vmul.f32 0.2, %v314_v39 }
 0x240   :  { %v319_v42 = vsel %vm317_vm2, %v314_v39, %v318_v41  ;;  %v622_v41 = vld [vmem:[#allocation11 + $0x60] sm:$0xff] }
 0x241   :  { %933 = vmatmul.mubr.f32.vlgmr.msra.gmra.mrb[2].mxu0 %v319_v42  ;;  %v623_v42 = vld [vmem:[#allocation11 + $0x68] sm:$0xff] }
 0x242   :  { %1002 = vmatprep.mubr.msk.f32.mxu0 %vm1369_vm0, %v1370_v1  ;;  %1138 = vmatpush3.bf16.msra.mxu0 %v1137_v52  ;;  %v1179_v43 = vpack.c.bf16 %v623_v42, %v622_v41 }
 0x243   :  { %1139 = vmatprep.subr.bf16.mxu0 %v1368_v0 }
 0x246   :  { %1141 = vmatpush3.bf16.msra.mxu0 %v1140_v54 }
 0x247   :  { %1142 = vmatprep.subr.bf16.mxu0 %v1368_v0 }
 0x24a   :  { %1144 = vmatpush3.bf16.msra.mxu0 %v1143_v57 }
 0x24b   :  { %1145 = vmatprep.subr.bf16.mxu0 %v1368_v0 }
 0x24e   :  { %1147 = vmatpush3.bf16.msra.mxu0 %v1146_v60 }
 0x24f   :  { %1148 = vmatprep.subr.bf16.mxu0 %v1368_v0 }
 0x252   :  { %1150 = vmatpush3.bf16.msra.mxu0 %v1149_v63 }
 0x253   :  { %1151 = vmatprep.subr.bf16.mxu0 %v1368_v0 }
 0x256   :  { %1153 = vmatpush3.bf16.msra.mxu0 %v1152_v4 }
 0x257   :  { %1154 = vmatprep.subr.bf16.mxu0 %v1368_v0 }
 0x25a   :  { %1156 = vmatpush3.bf16.msra.mxu0 %v1155_v7 }
 0x25b   :  { %1157 = vmatprep.subr.bf16.mxu0 %v1368_v0 }
 0x25e   :  { %1159 = vmatpush3.bf16.msra.mxu0 %v1158_v18 }
 0x314   :  { %v409_v9 = vpop.f32.mrb[2].mxu0 }
 0x315   :  { %v410_v10 = vadd.f32 %v724_v8, %v409_v9  ;;  %v934_v11 = vpop.f32.mrb[3].mxu0 }
 0x317   :  { %vm413_vm3 = vcmp.ge.f32.partialorder %v410_v10, 0.0  ;;  %v414_v12 = vmul.f32 0.2, %v410_v10 }
 0x319   :  { %v415_v13 = vsel %vm413_vm3, %v410_v10, %v414_v12 }
 0x31a   :  { %v416_v14 = vadd.f32 %v415_v13, %v1590_v15  ;;  %v1167_v15 = vpack.c.bf16 %v615_v26, %v614_v25 }
 0x31c   :  { %968 = vmatmul.mubr.f32.vlgmr.msra.gmra.mrb[2].mxu1 %v416_v14 }
 0x31d   :  { %1037 = vmatprep.mubr.msk.f32.mxu1 %vm1369_vm0, %v1370_v1  ;;  %1162 = vmatpush3.bf16.msra.mxu1 %v1161_v22  ;;  %v616_v1 = vld [vmem:[#allocation11 + $0x30] sm:$0xff] }
 0x31e   :  { %1163 = vmatprep.subr.bf16.mxu1 %v1368_v0  ;;  %v1170_v28 = vpack.c.bf16 %v617_v27, %v616_v1 }
 0x321   :  { %1165 = vmatpush3.bf16.msra.mxu1 %v1164_v24 }
 0x322   :  { %1166 = vmatprep.subr.bf16.mxu1 %v1368_v0 }
 0x325   :  { %1168 = vmatpush3.bf16.msra.mxu1 %v1167_v15 }
 0x326   :  { %1169 = vmatprep.subr.bf16.mxu1 %v1368_v0 }
 0x329   :  { %1171 = vmatpush3.bf16.msra.mxu1 %v1170_v28 }
 0x32a   :  { %1172 = vmatprep.subr.bf16.mxu1 %v1368_v0 }
 0x32d   :  { %1174 = vmatpush3.bf16.msra.mxu1 %v1173_v31 }
 0x32e   :  { %1175 = vmatprep.subr.bf16.mxu1 %v1368_v0 }
 0x331   :  { %1177 = vmatpush3.bf16.msra.mxu1 %v1176_v34 }
 0x332   :  { %1178 = vmatprep.subr.bf16.mxu1 %v1368_v0 }
 0x335   :  { %1180 = vmatpush3.bf16.msra.mxu1 %v1179_v43 }
 0x336   :  { %1181 = vmatprep.subr.bf16.mxu1 %v1368_v0  ;;  %v727_v0 = vld [vmem:[%s1662_s12] ss:$0 sm:$0xff] }
 0x339   :  { %1183 = vmatpush3.bf16.msra.mxu1 %v1182_v46 }
 0x3ef   :  { %v506_v36 = vpop.f32.mrb[2].mxu1 }
 0x3f0   :  { %v507_v37 = vadd.f32 %v725_v35, %v506_v36  ;;  %v969_v38 = vpop.f32.mrb[3].mxu1 }
 0x3f2   :  { %vm510_vm4 = vcmp.ge.f32.partialorder %v507_v37, 0.0  ;;  %v511_v39 = vmul.f32 0.2, %v507_v37 }
 0x3f4   :  { %v512_v40 = vsel %vm510_vm4, %v507_v37, %v511_v39 }
 0x3f5   :  { %1003 = vmatmul.mubr.f32.vlgmr.msra.gmra.mrb[4].mxu0 %v512_v40 }
 0x4c8   :  { %v602_v48 = vpop.f32.mrb[4].mxu0 }
 0x4c9   :  { %v603_v49 = vadd.f32 %v726_v47, %v602_v48  ;;  %v1004_v50 = vpop.f32.mrb[5].mxu0 }
 0x4cb   :  { %vm606_vm5 = vcmp.ge.f32.partialorder %v603_v49, 0.0  ;;  %v607_v51 = vmul.f32 0.2, %v603_v49 }
 0x4cd   :  { %v608_v52 = vsel %vm606_vm5, %v603_v49, %v607_v51 }
 0x4ce   :  { %v609_v53 = vadd.f32 %v608_v52, %v416_v14 }
 0x4d0   :  { %1038 = vmatmul.mubr.f32.vlgmr.msra.gmra.mrb[4].mxu1 %v609_v53 }
 0x5a3   :  { %v699_v54 = vpop.f32.mrb[4].mxu1 }
 0x5a4   :  { %v700_v55 = vadd.f32 %v727_v0, %v699_v54  ;;  %v1039_v56 = vpop.f32.mrb[5].mxu1 }
 0x5a6   :  { %703 = vst [vmem:[#allocation13] sm:$0xff] %v700_v55 }
 0x5a7   :  { %1339 = shalt.err (!%p1336_p10)
}
 0x5a8   :  { %s1340_s23 = scalar_lea.hbm %s1663_s13, 128 }
 0x5a9   :  { %p1341_p11 = scmp.ne.s32.totalorder %s1663_s13, %s1340_s23  ;;  %p1344_p12 = scmp.lt.u32.totalorder %s1340_s23, %s1663_s13 }
 0x5ab   :  { %p1346_p13 = pnand %p1344_p12, %p1341_p11 }
 0x5ad   :  { %1349 = shalt.err (!%p1346_p13)
}
 0x5ae   :  { %713 = dma.vmem_to_hbm [thread:$0]  %s711_s5, 128, %s1663_s13, [#allocation4]  }
 0x5af   :  { %1358 = dma.done.wait [#allocation4], 128  }
 0x5b0   :  { %1359 = vsyncadd [#allocation4], 4294967168 }
 0x5b1   :  { %717 = vsyncpa [#allocation3], 1 }
 0x5b2   :  { %718 = vsyncpa [#allocation6], 1 }
 0x5b3   :  { %719 = vsyncpa [#allocation9], 1 }
 0x5b4   :  { %720 = vsyncpa [#allocation12], 1 }
 0x5b5   :  { %721 = vsyncpa [#allocation4], 1 }

</bundles_post_ra>
